<compile_context>
chip_gen: v7x
topology: tpu7x:2x2x1
jax: 0.10.0
libtpu: 0.0.40
codegen_flags: <defaults>
</compile_context>

<pallas_src>
import jax
import jax.numpy as jnp
from jax.experimental import pallas as pl
from jax.experimental.pallas import tpu as pltpu


def _round_up(x, m):
    return ((x + m - 1) // m) * m


def _pick_tile(dim, align, candidates):
    """Pick the tile size from `candidates` that minimizes padding of `dim`.

    Ties prefer the larger tile (fewer grid steps, larger DMAs).  Dims smaller
    than the smallest candidate get a single aligned tile.
    """
    dim_a = _round_up(dim, align)
    if dim_a <= candidates[0]:
        return dim_a
    best, best_pad = None, None
    for c in candidates:
        pad = _round_up(dim, c) - dim
        if best is None or pad < best_pad or (pad == best_pad and c > best):
            best, best_pad = c, pad
    return best


# ---------------------------------------------------------------------------
# Pallas kernels
# ---------------------------------------------------------------------------
def _matmul_bias_relu_kernel(p_ref, w_ref, b_ref, o_ref, acc_ref):
    """One (TM, TN) output tile of patches @ (scale-folded) weights.

    k (reduction over im2col columns) is the innermost grid axis.  bf16
    operands feed the MXU; accumulation is f32 in VMEM scratch; the fused
    bias + ReLU epilogue runs once, on the last K step, and casts to the
    output dtype (bf16 for intermediate layers).
    """
    k = pl.program_id(2)

    @pl.when(k == 0)
    def _():
        acc_ref[...] = jnp.zeros_like(acc_ref)

    acc_ref[...] += jnp.dot(p_ref[...], w_ref[...],
                            preferred_element_type=jnp.float32)

    @pl.when(k == pl.num_programs(2) - 1)
    def _():
        o_ref[...] = jnp.maximum(acc_ref[...] + b_ref[...],
                                 0.0).astype(o_ref.dtype)


def _maxpool_kernel(x_ref, o_ref, acc_ref):
    """Running max over the 9 window taps (grid axis 1, 'arbitrary')."""
    t = pl.program_id(1)

    @pl.when(t == 0)
    def _():
        acc_ref[...] = jnp.full_like(acc_ref, -jnp.inf)

    acc_ref[...] = jnp.maximum(acc_ref[...], x_ref[0].astype(jnp.float32))

    @pl.when(t == pl.num_programs(1) - 1)
    def _():
        o_ref[...] = acc_ref[...].astype(o_ref.dtype)


# ---------------------------------------------------------------------------
# Wrappers (glue: im2col, BN folding, padding to TPU-friendly tiles)
# ---------------------------------------------------------------------------
def conv_bn_relu(x_nhwc, w, b, gamma, beta, mean, var, *, stride, padding,
                 eps=1e-5, out_dtype=jnp.float32):
    """Conv2d(kxk, stride, padding) + BatchNorm2d(eval) + ReLU, NHWC in/out."""
    N, H, W, Cin = x_nhwc.shape
    Cout, _, kh, kw = w.shape

    # bf16 activations *before* the im2col expansion: the slab is kh*kw times
    # larger than the input, so all of that glue traffic is half-width.
    x_bf = x_nhwc.astype(jnp.bfloat16)
    xp = jnp.pad(x_bf, ((0, 0), (padding, padding), (padding, padding),
                        (0, 0)))
    Hp, Wp = H + 2 * padding, W + 2 * padding
    Ho = (Hp - kh) // stride + 1
    Wo = (Wp - kw) // stride + 1

    # im2col: column order is (i, j, cin) over the kernel window.
    # TODO(synk): read the kh*kw taps directly from the padded NHWC input
    # inside the kernel (tap axis as an extra 'arbitrary' grid dim) to avoid
    # materializing the P x (kh*kw*Cin) slab for very large activations.
    cols = []
    for i in range(kh):
        for j in range(kw):
            cols.append(
                xp[:, i:i + stride * (Ho - 1) + 1:stride,
                      j:j + stride * (Wo - 1) + 1:stride, :])
    patches = jnp.concatenate(cols, axis=-1).reshape(N * Ho * Wo,
                                                     kh * kw * Cin)

    # Fold conv bias + eval-mode BatchNorm: scale goes into the weights (f32,
    # then bf16 cast), only a per-channel bias add remains in the kernel.
    scale = gamma / jnp.sqrt(var + eps)
    bias = beta + (b - mean) * scale
    wm = jnp.transpose(w, (2, 3, 1, 0)).reshape(kh * kw * Cin, Cout)
    wm = (wm * scale[None, :]).astype(jnp.bfloat16)

    P, K = patches.shape

    # Padding-aware tile selection (rows 8-sublane aligned, cols 128 lanes).
    TM = _pick_tile(P, 8, (128, 256, 512, 1024))
    TK = _pick_tile(K, 128, (128, 256, 512))
    TN = _pick_tile(Cout, 128, (128, 256))

    # v7x megacore: keep the parallel grid >= 2 blocks when the size allows.
    if P > 8 and _round_up(P, TM) // TM == 1 and _round_up(Cout, TN) // TN == 1:
        TM = _round_up((P + 1) // 2, 8)

    P_pad = _round_up(P, TM)
    K_pad = _round_up(K, TK)
    C_pad = _round_up(Cout, TN)

    patches_p = jnp.pad(patches, ((0, P_pad - P), (0, K_pad - K)))
    wm_p = jnp.pad(wm, ((0, K_pad - K), (0, C_pad - Cout)))
    bias_p = jnp.pad(bias, (0, C_pad - Cout)).reshape(1, C_pad)

    grid = (P_pad // TM, C_pad // TN, K_pad // TK)
    out_bytes = jnp.dtype(out_dtype).itemsize

    # Tight VMEM request (double-buffered ins/outs + f32 accumulator) plus
    # headroom; never blanket-request the whole physical VMEM (64 MiB on v7x).
    vmem_need = (2 * (TM * TK * 2 + TK * TN * 2 + 8 * TN * 4)
                 + 2 * TM * TN * out_bytes + TM * TN * 4)
    vmem_limit = int(min(max(2 * vmem_need, 8 << 20), 32 << 20))

    cost = pl.CostEstimate(
        flops=2 * P_pad * K_pad * C_pad,
        transcendentals=0,
        bytes_accessed=(P_pad * K_pad * 2 * (C_pad // TN)      # patches re-read
                        + K_pad * C_pad * 2 * (P_pad // TM)    # weights re-read
                        + P_pad * C_pad * out_bytes),          # output write
    )

    out = pl.pallas_call(
        _matmul_bias_relu_kernel,
        out_shape=jax.ShapeDtypeStruct((P_pad, C_pad), out_dtype),
        grid_spec=pltpu.PrefetchScalarGridSpec(
            num_scalar_prefetch=0,
            grid=grid,
            in_specs=[
                pl.BlockSpec((TM, TK), lambda i, j, k: (i, k)),
                pl.BlockSpec((TK, TN), lambda i, j, k: (k, j)),
                pl.BlockSpec((1, TN), lambda i, j, k: (0, j)),
            ],
            out_specs=pl.BlockSpec((TM, TN), lambda i, j, k: (i, j)),
            scratch_shapes=[pltpu.VMEM((TM, TN), jnp.float32)],
        ),
        compiler_params=pltpu.CompilerParams(
            dimension_semantics=("parallel", "parallel", "arbitrary"),
            vmem_limit_bytes=vmem_limit,
        ),
        cost_estimate=cost,
    )(patches_p, wm_p, bias_p)

    return out[:P, :Cout].reshape(N, Ho, Wo, Cout)


def maxpool3x3_s2(x_nhwc):
    """MaxPool2d(kernel_size=3, stride=2, padding=0), NHWC in/out (exact f32)."""
    N, H, W, C = x_nhwc.shape
    Ho = (H - 3) // 2 + 1
    Wo = (W - 3) // 2 + 1
    P = N * Ho * Wo

    # One (P, C) slab per window tap; each tap is ~1/4 of the input (stride 2).
    # The tap axis is reduced inside the kernel (running-max VMEM scratch), so
    # only a single (TM, C) tap tile is resident per grid step.
    taps = []
    for i in range(3):
        for j in range(3):
            taps.append(
                x_nhwc[:, i:i + 2 * (Ho - 1) + 1:2,
                          j:j + 2 * (Wo - 1) + 1:2, :].reshape(P, C))
    stacked = jnp.stack(taps, axis=0)  # (9, P, C)

    TM = _pick_tile(P, 8, (128, 256, 512, 1024))
    if P > 8 and _round_up(P, TM) // TM == 1:
        TM = _round_up((P + 1) // 2, 8)   # >= 2 parallel blocks (v7x megacore)
    P_pad = _round_up(P, TM)
    C_pad = _round_up(C, 128)

    stacked_p = jnp.pad(stacked, ((0, 0), (0, P_pad - P), (0, C_pad - C)))

    in_bytes = jnp.dtype(x_nhwc.dtype).itemsize
    vmem_need = (2 * TM * C_pad * in_bytes        # input double buffer
                 + 2 * TM * C_pad * in_bytes      # output double buffer
                 + TM * C_pad * 4)                # f32 running-max scratch
    vmem_limit = int(min(max(2 * vmem_need, 8 << 20), 32 << 20))

    out = pl.pallas_call(
        _maxpool_kernel,
        out_shape=jax.ShapeDtypeStruct((P_pad, C_pad), x_nhwc.dtype),
        grid_spec=pltpu.PrefetchScalarGridSpec(
            num_scalar_prefetch=0,
            grid=(P_pad // TM, 9),
            in_specs=[pl.BlockSpec((1, TM, C_pad), lambda i, t: (t, i, 0))],
            out_specs=pl.BlockSpec((TM, C_pad), lambda i, t: (i, 0)),
            scratch_shapes=[pltpu.VMEM((TM, C_pad), jnp.float32)],
        ),
        compiler_params=pltpu.CompilerParams(
            dimension_semantics=("parallel", "arbitrary"),
            vmem_limit_bytes=vmem_limit,
        ),
    )(stacked_p)

    return out[:P, :C].reshape(N, Ho, Wo, C)


def reduction_a_forward(x_nchw, p_conv1, p_conv2, p_conv3, p_conv4):
    """Reduction_A.forward.  Input/output NCHW (PyTorch convention)."""
    x = jnp.transpose(x_nchw, (0, 2, 3, 1))                    # NCHW -> NHWC
    c1 = maxpool3x3_s2(x)                                      # maxpool 3x3 s2
    c2 = conv_bn_relu(x, stride=2, padding=0,
                      out_dtype=jnp.float32, **p_conv1)        # conv3x3 s2
    # Intermediate activations in bf16 (the next conv casts to bf16 anyway).
    c3 = conv_bn_relu(x, stride=1, padding=1,
                      out_dtype=jnp.bfloat16, **p_conv2)       # conv1x1 p1
    c3_1 = conv_bn_relu(c3, stride=1, padding=0,
                        out_dtype=jnp.bfloat16, **p_conv3)     # conv3x3
    c3_2 = conv_bn_relu(c3_1, stride=2, padding=0,
                        out_dtype=jnp.float32, **p_conv4)      # conv3x3 s2
    cat = jnp.concatenate([c1, c2, c3_2], axis=-1)             # channel concat
    return jnp.transpose(cat, (0, 3, 1, 2))                    # NHWC -> NCHW


# ---------------------------------------------------------------------------
# Deterministic parameter construction + smoke test
# ---------------------------------------------------------------------------
def make_conv_params(key, cin, cout, ksize):
    k1, k2, k3, k4, k5, k6 = jax.random.split(key, 6)
    return dict(
        w=0.1 * jax.random.normal(k1, (cout, cin, ksize, ksize), jnp.float32),
        b=0.05 * jax.random.normal(k2, (cout,), jnp.float32),
        gamma=1.0 + 0.1 * jax.random.normal(k3, (cout,), jnp.float32),
        beta=0.1 * jax.random.normal(k4, (cout,), jnp.float32),
        mean=0.05 * jax.random.normal(k5, (cout,), jnp.float32),
        var=0.5 + jnp.abs(jax.random.normal(k6, (cout,), jnp.float32)),
    )


if __name__ == "__main__":
    # Small shapes consistent with Reduction_A(input=C_in, n, k, l, m)
    N, C_in, H, W = 2, 4, 16, 16
    n_ch, k_ch, l_ch, m_ch = 8, 6, 10, 12

    key = jax.random.PRNGKey(0)
    kx, kc1, kc2, kc3, kc4 = jax.random.split(key, 5)

    x = jax.random.normal(kx, (N, C_in, H, W), jnp.float32)
    p_conv1 = make_conv_params(kc1, C_in, n_ch, 3)   # conv3x3(C_in -> n, s2)
    p_conv2 = make_conv_params(kc2, C_in, k_ch, 1)   # conv1x1(C_in -> k, p1)
    p_conv3 = make_conv_params(kc3, k_ch, l_ch, 3)   # conv3x3(k -> l)
    p_conv4 = make_conv_params(kc4, l_ch, m_ch, 3)   # conv3x3(l -> m, s2)

    fwd = jax.jit(reduction_a_forward)
    out = fwd(x, p_conv1, p_conv2, p_conv3, p_conv4)
    out = jax.block_until_ready(out)

    expected_shape = (N, C_in + n_ch + m_ch, (H - 3) // 2 + 1, (W - 3) // 2 + 1)
    assert out.shape == expected_shape, (out.shape, expected_shape)
    assert out.dtype == jnp.float32
    assert bool(jnp.all(jnp.isfinite(out)))
    print("KERNEL_OK")
</pallas_src>

<mosaic_0001>
module attributes {stable_mosaic.version = 11 : i64} {
  func.func @_matmul_bias_relu_kernel(%arg0: i32, %arg1: i32, %arg2: i32, %arg3: memref<56x128xbf16, #tpu.memory_space<vmem>>, %arg4: memref<128x128xbf16, #tpu.memory_space<vmem>>, %arg5: memref<1x128xf32, #tpu.memory_space<vmem>>, %arg6: memref<56x128xf32, #tpu.memory_space<vmem>>, %arg7: memref<56x128xf32, #tpu.memory_space<vmem>>) attributes {dimension_semantics = [#tpu.dimension_semantics<parallel>, #tpu.dimension_semantics<parallel>, #tpu.dimension_semantics<arbitrary>], iteration_bounds = array<i64: 2, 1, 1>, scalar_prefetch = 0 : i64, scratch_operands = 1 : i64, tpu.core_type = #tpu.core_type<tc>, window_params = [{transform_indices = @transform_0, window_bounds = array<i64: 56, 128>}, {transform_indices = @transform_1, window_bounds = array<i64: 128, 128>}, {transform_indices = @transform_2, window_bounds = array<i64: 1, 128>}, {transform_indices = @transform_3, window_bounds = array<i64: 56, 128>}]} {
    %c0_i32 = arith.constant 0 : i32
    %0 = arith.cmpi eq, %arg2, %c0_i32 : i32
    %1 = arith.extui %0 : i1 to i32
    %c0_i32_0 = arith.constant 0 : i32
    %2 = arith.cmpi ne, %1, %c0_i32_0 : i32
    scf.if %2 {
      %cst_10 = arith.constant 0.000000e+00 : f32
      %12 = vector.broadcast %cst_10 : f32 to vector<56x128xf32>
      %c0_11 = arith.constant 0 : index
      %c0_12 = arith.constant 0 : index
      %13 = vector.load %arg7[%c0_11, %c0_12] : memref<56x128xf32, #tpu.memory_space<vmem>>, vector<56x128xf32>
      tpu.vector_store %arg7[%c0_11, %c0_12], %12 {strides = array<i32>} : memref<56x128xf32, #tpu.memory_space<vmem>>, vector<56x128xf32>,
    } else {
    }
    %c0 = arith.constant 0 : index
    %c0_1 = arith.constant 0 : index
    %3 = vector.load %arg7[%c0, %c0_1] : memref<56x128xf32, #tpu.memory_space<vmem>>, vector<56x128xf32>
    %c0_2 = arith.constant 0 : index
    %c0_3 = arith.constant 0 : index
    %4 = vector.load %arg3[%c0_2, %c0_3] : memref<56x128xbf16, #tpu.memory_space<vmem>>, vector<56x128xbf16>
    %c0_4 = arith.constant 0 : index
    %c0_5 = arith.constant 0 : index
    %5 = vector.load %arg4[%c0_4, %c0_5] : memref<128x128xbf16, #tpu.memory_space<vmem>>, vector<128x128xbf16>
    %cst = arith.constant dense<0.000000e+00> : vector<56x128xf32>
    %6 = tpu.matmul %4, %5, %cst {dimension_numbers = #tpu.dot_dimension_numbers<[1], [0], [0], [1], [0, 0, 1, 1], [], []>} : vector<56x128xbf16>, vector<128x128xbf16>, vector<56x128xf32> -> vector<56x128xf32>
    %7 = arith.addf %3, %6 : vector<56x128xf32>
    %c0_6 = arith.constant 0 : index
    %c0_7 = arith.constant 0 : index
    %8 = vector.load %arg7[%c0_6, %c0_7] : memref<56x128xf32, #tpu.memory_space<vmem>>, vector<56x128xf32>
    tpu.vector_store %arg7[%c0_6, %c0_7], %7 {strides = array<i32>} : memref<56x128xf32, #tpu.memory_space<vmem>>, vector<56x128xf32>,
    %c0_i32_8 = arith.constant 0 : i32
    %9 = arith.cmpi eq, %arg2, %c0_i32_8 : i32
    %10 = arith.extui %9 : i1 to i32
    %c0_i32_9 = arith.constant 0 : i32
    %11 = arith.cmpi ne, %10, %c0_i32_9 : i32
    scf.if %11 {
      %c0_10 = arith.constant 0 : index
      %c0_11 = arith.constant 0 : index
      %12 = vector.load %arg7[%c0_10, %c0_11] : memref<56x128xf32, #tpu.memory_space<vmem>>, vector<56x128xf32>
      %c0_12 = arith.constant 0 : index
      %c0_13 = arith.constant 0 : index
      %13 = vector.load %arg5[%c0_12, %c0_13] : memref<1x128xf32, #tpu.memory_space<vmem>>, vector<1x128xf32>
      %14 = vector.broadcast %13 : vector<1x128xf32> to vector<56x128xf32>
      %15 = arith.addf %12, %14 : vector<56x128xf32>
      %cst_14 = arith.constant 0.000000e+00 : f32
      %16 = vector.broadcast %cst_14 : f32 to vector<56x128xf32>
      %17 = arith.maximumf %15, %16 : vector<56x128xf32>
      %c0_15 = arith.constant 0 : index
      %c0_16 = arith.constant 0 : index
      %18 = vector.load %arg6[%c0_15, %c0_16] : memref<56x128xf32, #tpu.memory_space<vmem>>, vector<56x128xf32>
      tpu.vector_store %arg6[%c0_15, %c0_16], %17 {strides = array<i32>} : memref<56x128xf32, #tpu.memory_space<vmem>>, vector<56x128xf32>,
    } else {
    }
    return
  }
  func.func @transform_0(%arg0: i32, %arg1: i32, %arg2: i32) -> (i32, i32) {
    %c0_i32 = arith.constant 0 : i32
    return %arg0, %arg2 : i32, i32
  }
  func.func @transform_1(%arg0: i32, %arg1: i32, %arg2: i32) -> (i32, i32) {
    %c0_i32 = arith.constant 0 : i32
    return %arg2, %arg1 : i32, i32
  }
  func.func @transform_2(%arg0: i32, %arg1: i32, %arg2: i32) -> (i32, i32) {
    %c0_i32 = arith.constant 0 : i32
    %c0_i32_0 = arith.constant 0 : i32
    return %c0_i32, %arg1 : i32, i32
  }
  func.func @transform_3(%arg0: i32, %arg1: i32, %arg2: i32) -> (i32, i32) {
    %c0_i32 = arith.constant 0 : i32
    return %arg0, %arg1 : i32, i32
  }
}

module attributes {stable_mosaic.version = 11 : i64} {
  func.func @_matmul_bias_relu_kernel(%arg0: i32, %arg1: i32, %arg2: i32, %arg3: memref<256x128xbf16, #tpu.memory_space<vmem>>, %arg4: memref<128x128xbf16, #tpu.memory_space<vmem>>, %arg5: memref<1x128xf32, #tpu.memory_space<vmem>>, %arg6: memref<256x128xbf16, #tpu.memory_space<vmem>>, %arg7: memref<256x128xf32, #tpu.memory_space<vmem>>) attributes {dimension_semantics = [#tpu.dimension_semantics<parallel>, #tpu.dimension_semantics<parallel>, #tpu.dimension_semantics<arbitrary>], iteration_bounds = array<i64: 3, 1, 1>, scalar_prefetch = 0 : i64, scratch_operands = 1 : i64, tpu.core_type = #tpu.core_type<tc>, window_params = [{transform_indices = @transform_0, window_bounds = array<i64: 256, 128>}, {transform_indices = @transform_1, window_bounds = array<i64: 128, 128>}, {transform_indices = @transform_2, window_bounds = array<i64: 1, 128>}, {transform_indices = @transform_3, window_bounds = array<i64: 256, 128>}]} {
    %c0_i32 = arith.constant 0 : i32
    %0 = arith.cmpi eq, %arg2, %c0_i32 : i32
    %1 = arith.extui %0 : i1 to i32
    %c0_i32_0 = arith.constant 0 : i32
    %2 = arith.cmpi ne, %1, %c0_i32_0 : i32
    scf.if %2 {
      %cst_10 = arith.constant 0.000000e+00 : f32
      %12 = vector.broadcast %cst_10 : f32 to vector<256x128xf32>
      %c0_11 = arith.constant 0 : index
      %c0_12 = arith.constant 0 : index
      %13 = vector.load %arg7[%c0_11, %c0_12] : memref<256x128xf32, #tpu.memory_space<vmem>>, vector<256x128xf32>
      tpu.vector_store %arg7[%c0_11, %c0_12], %12 {strides = array<i32>} : memref<256x128xf32, #tpu.memory_space<vmem>>, vector<256x128xf32>,
    } else {
    }
    %c0 = arith.constant 0 : index
    %c0_1 = arith.constant 0 : index
    %3 = vector.load %arg7[%c0, %c0_1] : memref<256x128xf32, #tpu.memory_space<vmem>>, vector<256x128xf32>
    %c0_2 = arith.constant 0 : index
    %c0_3 = arith.constant 0 : index
    %4 = vector.load %arg3[%c0_2, %c0_3] : memref<256x128xbf16, #tpu.memory_space<vmem>>, vector<256x128xbf16>
    %c0_4 = arith.constant 0 : index
    %c0_5 = arith.constant 0 : index
    %5 = vector.load %arg4[%c0_4, %c0_5] : memref<128x128xbf16, #tpu.memory_space<vmem>>, vector<128x128xbf16>
    %cst = arith.constant dense<0.000000e+00> : vector<256x128xf32>
    %6 = tpu.matmul %4, %5, %cst {dimension_numbers = #tpu.dot_dimension_numbers<[1], [0], [0], [1], [0, 0, 1, 1], [], []>} : vector<256x128xbf16>, vector<128x128xbf16>, vector<256x128xf32> -> vector<256x128xf32>
    %7 = arith.addf %3, %6 : vector<256x128xf32>
    %c0_6 = arith.constant 0 : index
    %c0_7 = arith.constant 0 : index
    %8 = vector.load %arg7[%c0_6, %c0_7] : memref<256x128xf32, #tpu.memory_space<vmem>>, vector<256x128xf32>
    tpu.vector_store %arg7[%c0_6, %c0_7], %7 {strides = array<i32>} : memref<256x128xf32, #tpu.memory_space<vmem>>, vector<256x128xf32>,
    %c0_i32_8 = arith.constant 0 : i32
    %9 = arith.cmpi eq, %arg2, %c0_i32_8 : i32
    %10 = arith.extui %9 : i1 to i32
    %c0_i32_9 = arith.constant 0 : i32
    %11 = arith.cmpi ne, %10, %c0_i32_9 : i32
    scf.if %11 {
      %c0_10 = arith.constant 0 : index
      %c0_11 = arith.constant 0 : index
      %12 = vector.load %arg7[%c0_10, %c0_11] : memref<256x128xf32, #tpu.memory_space<vmem>>, vector<256x128xf32>
      %c0_12 = arith.constant 0 : index
      %c0_13 = arith.constant 0 : index
      %13 = vector.load %arg5[%c0_12, %c0_13] : memref<1x128xf32, #tpu.memory_space<vmem>>, vector<1x128xf32>
      %14 = vector.broadcast %13 : vector<1x128xf32> to vector<256x128xf32>
      %15 = arith.addf %12, %14 : vector<256x128xf32>
      %cst_14 = arith.constant 0.000000e+00 : f32
      %16 = vector.broadcast %cst_14 : f32 to vector<256x128xf32>
      %17 = arith.maximumf %15, %16 : vector<256x128xf32>
      %18 = arith.truncf %17 : vector<256x128xf32> to vector<256x128xbf16>
      %c0_15 = arith.constant 0 : index
      %c0_16 = arith.constant 0 : index
      %19 = vector.load %arg6[%c0_15, %c0_16] : memref<256x128xbf16, #tpu.memory_space<vmem>>, vector<256x128xbf16>
      tpu.vector_store %arg6[%c0_15, %c0_16], %18 {strides = array<i32>} : memref<256x128xbf16, #tpu.memory_space<vmem>>, vector<256x128xbf16>,
    } else {
    }
    return
  }
  func.func @transform_0(%arg0: i32, %arg1: i32, %arg2: i32) -> (i32, i32) {
    %c0_i32 = arith.constant 0 : i32
    return %arg0, %arg2 : i32, i32
  }
  func.func @transform_1(%arg0: i32, %arg1: i32, %arg2: i32) -> (i32, i32) {
    %c0_i32 = arith.constant 0 : i32
    return %arg2, %arg1 : i32, i32
  }
  func.func @transform_2(%arg0: i32, %arg1: i32, %arg2: i32) -> (i32, i32) {
    %c0_i32 = arith.constant 0 : i32
    %c0_i32_0 = arith.constant 0 : i32
    return %c0_i32, %arg1 : i32, i32
  }
  func.func @transform_3(%arg0: i32, %arg1: i32, %arg2: i32) -> (i32, i32) {
    %c0_i32 = arith.constant 0 : i32
    return %arg0, %arg1 : i32, i32
  }
}

module attributes {stable_mosaic.version = 11 : i64} {
  func.func @_matmul_bias_relu_kernel(%arg0: i32, %arg1: i32, %arg2: i32, %arg3: memref<256x128xbf16, #tpu.memory_space<vmem>>, %arg4: memref<128x128xbf16, #tpu.memory_space<vmem>>, %arg5: memref<1x128xf32, #tpu.memory_space<vmem>>, %arg6: memref<256x128xbf16, #tpu.memory_space<vmem>>, %arg7: memref<256x128xf32, #tpu.memory_space<vmem>>) attributes {dimension_semantics = [#tpu.dimension_semantics<parallel>, #tpu.dimension_semantics<parallel>, #tpu.dimension_semantics<arbitrary>], iteration_bounds = array<i64: 2, 1, 1>, scalar_prefetch = 0 : i64, scratch_operands = 1 : i64, tpu.core_type = #tpu.core_type<tc>, window_params = [{transform_indices = @transform_0, window_bounds = array<i64: 256, 128>}, {transform_indices = @transform_1, window_bounds = array<i64: 128, 128>}, {transform_indices = @transform_2, window_bounds = array<i64: 1, 128>}, {transform_indices = @transform_3, window_bounds = array<i64: 256, 128>}]} {
    %c0_i32 = arith.constant 0 : i32
    %0 = arith.cmpi eq, %arg2, %c0_i32 : i32
    %1 = arith.extui %0 : i1 to i32
    %c0_i32_0 = arith.constant 0 : i32
    %2 = arith.cmpi ne, %1, %c0_i32_0 : i32
    scf.if %2 {
      %cst_10 = arith.constant 0.000000e+00 : f32
      %12 = vector.broadcast %cst_10 : f32 to vector<256x128xf32>
      %c0_11 = arith.constant 0 : index
      %c0_12 = arith.constant 0 : index
      %13 = vector.load %arg7[%c0_11, %c0_12] : memref<256x128xf32, #tpu.memory_space<vmem>>, vector<256x128xf32>
      tpu.vector_store %arg7[%c0_11, %c0_12], %12 {strides = array<i32>} : memref<256x128xf32, #tpu.memory_space<vmem>>, vector<256x128xf32>,
    } else {
    }
    %c0 = arith.constant 0 : index
    %c0_1 = arith.constant 0 : index
    %3 = vector.load %arg7[%c0, %c0_1] : memref<256x128xf32, #tpu.memory_space<vmem>>, vector<256x128xf32>
    %c0_2 = arith.constant 0 : index
    %c0_3 = arith.constant 0 : index
    %4 = vector.load %arg3[%c0_2, %c0_3] : memref<256x128xbf16, #tpu.memory_space<vmem>>, vector<256x128xbf16>
    %c0_4 = arith.constant 0 : index
    %c0_5 = arith.constant 0 : index
    %5 = vector.load %arg4[%c0_4, %c0_5] : memref<128x128xbf16, #tpu.memory_space<vmem>>, vector<128x128xbf16>
    %cst = arith.constant dense<0.000000e+00> : vector<256x128xf32>
    %6 = tpu.matmul %4, %5, %cst {dimension_numbers = #tpu.dot_dimension_numbers<[1], [0], [0], [1], [0, 0, 1, 1], [], []>} : vector<256x128xbf16>, vector<128x128xbf16>, vector<256x128xf32> -> vector<256x128xf32>
    %7 = arith.addf %3, %6 : vector<256x128xf32>
    %c0_6 = arith.constant 0 : index
    %c0_7 = arith.constant 0 : index
    %8 = vector.load %arg7[%c0_6, %c0_7] : memref<256x128xf32, #tpu.memory_space<vmem>>, vector<256x128xf32>
    tpu.vector_store %arg7[%c0_6, %c0_7], %7 {strides = array<i32>} : memref<256x128xf32, #tpu.memory_space<vmem>>, vector<256x128xf32>,
    %c0_i32_8 = arith.constant 0 : i32
    %9 = arith.cmpi eq, %arg2, %c0_i32_8 : i32
    %10 = arith.extui %9 : i1 to i32
    %c0_i32_9 = arith.constant 0 : i32
    %11 = arith.cmpi ne, %10, %c0_i32_9 : i32
    scf.if %11 {
      %c0_10 = arith.constant 0 : index
      %c0_11 = arith.constant 0 : index
      %12 = vector.load %arg7[%c0_10, %c0_11] : memref<256x128xf32, #tpu.memory_space<vmem>>, vector<256x128xf32>
      %c0_12 = arith.constant 0 : index
      %c0_13 = arith.constant 0 : index
      %13 = vector.load %arg5[%c0_12, %c0_13] : memref<1x128xf32, #tpu.memory_space<vmem>>, vector<1x128xf32>
      %14 = vector.broadcast %13 : vector<1x128xf32> to vector<256x128xf32>
      %15 = arith.addf %12, %14 : vector<256x128xf32>
      %cst_14 = arith.constant 0.000000e+00 : f32
      %16 = vector.broadcast %cst_14 : f32 to vector<256x128xf32>
      %17 = arith.maximumf %15, %16 : vector<256x128xf32>
      %18 = arith.truncf %17 : vector<256x128xf32> to vector<256x128xbf16>
      %c0_15 = arith.constant 0 : index
      %c0_16 = arith.constant 0 : index
      %19 = vector.load %arg6[%c0_15, %c0_16] : memref<256x128xbf16, #tpu.memory_space<vmem>>, vector<256x128xbf16>
      tpu.vector_store %arg6[%c0_15, %c0_16], %18 {strides = array<i32>} : memref<256x128xbf16, #tpu.memory_space<vmem>>, vector<256x128xbf16>,
    } else {
    }
    return
  }
  func.func @transform_0(%arg0: i32, %arg1: i32, %arg2: i32) -> (i32, i32) {
    %c0_i32 = arith.constant 0 : i32
    return %arg0, %arg2 : i32, i32
  }
  func.func @transform_1(%arg0: i32, %arg1: i32, %arg2: i32) -> (i32, i32) {
    %c0_i32 = arith.constant 0 : i32
    return %arg2, %arg1 : i32, i32
  }
  func.func @transform_2(%arg0: i32, %arg1: i32, %arg2: i32) -> (i32, i32) {
    %c0_i32 = arith.constant 0 : i32
    %c0_i32_0 = arith.constant 0 : i32
    return %c0_i32, %arg1 : i32, i32
  }
  func.func @transform_3(%arg0: i32, %arg1: i32, %arg2: i32) -> (i32, i32) {
    %c0_i32 = arith.constant 0 : i32
    return %arg0, %arg1 : i32, i32
  }
}

module attributes {stable_mosaic.version = 11 : i64} {
  func.func @_maxpool_kernel(%arg0: i32, %arg1: i32, %arg2: memref<1x56x128xf32, #tpu.memory_space<vmem>>, %arg3: memref<56x128xf32, #tpu.memory_space<vmem>>, %arg4: memref<56x128xf32, #tpu.memory_space<vmem>>) attributes {dimension_semantics = [#tpu.dimension_semantics<parallel>, #tpu.dimension_semantics<arbitrary>], iteration_bounds = array<i64: 2, 9>, scalar_prefetch = 0 : i64, scratch_operands = 1 : i64, tpu.core_type = #tpu.core_type<tc>, window_params = [{transform_indices = @transform_0, window_bounds = array<i64: 1, 56, 128>}, {transform_indices = @transform_1, window_bounds = array<i64: 56, 128>}]} {
    %c0_i32 = arith.constant 0 : i32
    %0 = arith.cmpi eq, %arg1, %c0_i32 : i32
    %1 = arith.extui %0 : i1 to i32
    %c0_i32_0 = arith.constant 0 : i32
    %2 = arith.cmpi ne, %1, %c0_i32_0 : i32
    scf.if %2 {
      %cst = arith.constant 0xFF800000 : f32
      %11 = vector.broadcast %cst : f32 to vector<56x128xf32>
      %c0_8 = arith.constant 0 : index
      %c0_9 = arith.constant 0 : index
      %12 = vector.load %arg4[%c0_8, %c0_9] : memref<56x128xf32, #tpu.memory_space<vmem>>, vector<56x128xf32>
      tpu.vector_store %arg4[%c0_8, %c0_9], %11 {strides = array<i32>} : memref<56x128xf32, #tpu.memory_space<vmem>>, vector<56x128xf32>,
    } else {
    }
    %c0 = arith.constant 0 : index
    %c0_1 = arith.constant 0 : index
    %3 = vector.load %arg4[%c0, %c0_1] : memref<56x128xf32, #tpu.memory_space<vmem>>, vector<56x128xf32>
    %c0_2 = arith.constant 0 : index
    %c0_3 = arith.constant 0 : index
    %c0_4 = arith.constant 0 : index
    %4 = vector.load %arg2[%c0_2, %c0_3, %c0_4] : memref<1x56x128xf32, #tpu.memory_space<vmem>>, vector<1x56x128xf32>
    %5 = vector.shape_cast %4 : vector<1x56x128xf32> to vector<56x128xf32>
    %6 = arith.maximumf %3, %5 : vector<56x128xf32>
    %c0_5 = arith.constant 0 : index
    %c0_6 = arith.constant 0 : index
    %7 = vector.load %arg4[%c0_5, %c0_6] : memref<56x128xf32, #tpu.memory_space<vmem>>, vector<56x128xf32>
    tpu.vector_store %arg4[%c0_5, %c0_6], %6 {strides = array<i32>} : memref<56x128xf32, #tpu.memory_space<vmem>>, vector<56x128xf32>,
    %c8_i32 = arith.constant 8 : i32
    %8 = arith.cmpi eq, %arg1, %c8_i32 : i32
    %9 = arith.extui %8 : i1 to i32
    %c0_i32_7 = arith.constant 0 : i32
    %10 = arith.cmpi ne, %9, %c0_i32_7 : i32
    scf.if %10 {
      %c0_8 = arith.constant 0 : index
      %c0_9 = arith.constant 0 : index
      %11 = vector.load %arg4[%c0_8, %c0_9] : memref<56x128xf32, #tpu.memory_space<vmem>>, vector<56x128xf32>
      %c0_10 = arith.constant 0 : index
      %c0_11 = arith.constant 0 : index
      %12 = vector.load %arg3[%c0_10, %c0_11] : memref<56x128xf32, #tpu.memory_space<vmem>>, vector<56x128xf32>
      tpu.vector_store %arg3[%c0_10, %c0_11], %11 {strides = array<i32>} : memref<56x128xf32, #tpu.memory_space<vmem>>, vector<56x128xf32>,
    } else {
    }
    return
  }
  func.func @transform_0(%arg0: i32, %arg1: i32) -> (i32, i32, i32) {
    %c0_i32 = arith.constant 0 : i32
    %c0_i32_0 = arith.constant 0 : i32
    return %arg1, %arg0, %c0_i32 : i32, i32, i32
  }
  func.func @transform_1(%arg0: i32, %arg1: i32) -> (i32, i32) {
    %c0_i32 = arith.constant 0 : i32
    %c0_i32_0 = arith.constant 0 : i32
    return %arg0, %c0_i32 : i32, i32
  }
}

</mosaic_0001>

<bundles_post_ra>
// kernel: reduction_a_forward.6
= control target key start
LH: loop header
LB: loop body
LE: loop exit
PB: predicated region body
PF: predicated region fallthrough
CT: control target
= control target key end

     0   :  { %s754_s12 = smov 0   ;;  %s756_s13 = smov 0   ;;  %s824_s0 = inlined_call_operand.vmem [shape: bf16[112,128], index: 0, kind: input, shape index: {}]   ;;  %s825_s1 = inlined_call_operand.vmem [shape: bf16[128,128], index: 1, kind: input, shape index: {}]   ;;  %s826_s2 = inlined_call_operand.vmem [shape: f32[1,128], index: 2, kind: input, shape index: {}]   ;;  %s827_s3 = inlined_call_operand.vmem [shape: f32[112,128], index: 3, kind: output, shape index: {}]  }
   0x1   :  { %s758_s14 = smov 0  }
   0x2 LB: > { %s32_s15 = sadd.s32 1, %s728_s13  ;;  %p604_p0 = scmp.ge.s32.totalorder %s732_s14, 1  ;;  %s732_s14 = sphi %s758_s14, %s13_s14   ;;  %s728_s13 = sphi %s756_s13, %s829_s13   ;;  %s724_s12 = sphi %s754_s12, %s828_s12  }
   0x3   : > { %p34_p1 = scmp.ge.s32.totalorder %s32_s15, 2  ;;  %p188_p2 = scmp.lt.s32.totalorder %s732_s14, 3 }
   0x5   : > { %s831_s15 = smov (%p34_p1, %s32_s15), 0  ;;  %p189_p3 = pnand %p604_p0, %p188_p2 }
   0x6   : > { %v698_v0 = vld [vmem:[%s825_s1] sm:$0xff] (!%p189_p3)   ;;  %s229_s18 = smul.u32 (!%p189_p3), 7, %s724_s12  ;;  %v699_v1 = vld [vmem:[%s825_s1 + $0x8] sm:$0xff] (!%p189_p3)   ;;  %v700_v2 = vld [vmem:[%s825_s1 + $0x10] sm:$0xff] (!%p189_p3)  }
   0x7   : > { %192 = sbr.rel (%p189_p3) target bundleno = 259 (0x103), region = 32  ;;  %634 = vmatprep.subr.bf16.mxu0 (!%p189_p3), %v698_v0  ;;  %658 = vmatprep.subr.bf16.mxu1 (!%p189_p3), %v698_v0  ;;  %v701_v3 = vld [vmem:[%s825_s1 + $0x18] sm:$0xff] (!%p189_p3)   ;;  %v702_v6 = vld [vmem:[%s825_s1 + $0x20] sm:$0xff] (!%p189_p3)   ;;  %v703_v7 = vld [vmem:[%s825_s1 + $0x28] sm:$0xff] (!%p189_p3)  }
   0x8   : > { %p230_p4 = scmp.lt.s32.totalorder (!%p189_p3), %s229_s18, 13  ;;  %635 = vmatpush3.bf16.msra.mxu0 (!%p189_p3), %v698_v0  ;;  %666 = vmatpush3.bf16.msra.mxu1 (!%p189_p3), %v698_v0  ;;  %v704_v8 = vld [vmem:[%s825_s1 + $0x30] sm:$0xff] (!%p189_p3)   ;;  %v705_v9 = vld [vmem:[%s825_s1 + $0x38] sm:$0xff] (!%p189_p3)   ;;  %v619_v12 = vld [vmem:[%s826_s2] ss:$0 sm:$0xff] (!%p189_p3) }
   0x9   : > { %636 = vmatprep.subr.bf16.mxu0 (!%p189_p3), %v699_v1  ;;  %659 = vmatprep.subr.bf16.mxu1 (!%p189_p3), %v699_v1 }
   0xc   : > { %637 = vmatpush3.bf16.msra.mxu0 (!%p189_p3), %v699_v1  ;;  %667 = vmatpush3.bf16.msra.mxu1 (!%p189_p3), %v699_v1 }
   0xd   : > { %638 = vmatprep.subr.bf16.mxu0 (!%p189_p3), %v700_v2  ;;  %660 = vmatprep.subr.bf16.mxu1 (!%p189_p3), %v700_v2 }
   0xe   : > { %s833_s18 = smov (!%p230_p4, %s229_s18), 13 }
   0xf   : > { %s605_s23 = sshll.u32 %s833_s18, 2  ;;  %s606_s12 = sshll.u32 %s833_s18, 3 }
  0x10   : > { %s790_s28 = scalar_lea.vmem %s824_s0, %s605_s23  ;;  %639 = vmatpush3.bf16.msra.mxu0 %v700_v2  ;;  %668 = vmatpush3.bf16.msra.mxu1 %v700_v2  ;;  %s257_s19 = scalar_lea.vmem %s827_s3, %s606_s12 }
  0x11   : > { %v706_v4 = vld [vmem:[%s790_s28] sm:$0xff]   ;;  %v707_v5 = vld [vmem:[%s790_s28 + $0x10] sm:$0xff]   ;;  %640 = vmatprep.subr.bf16.mxu0 %v701_v3  ;;  %661 = vmatprep.subr.bf16.mxu1 %v701_v3  ;;  %v708_v10 = vld [vmem:[%s790_s28 + $0x8] sm:$0xff]  }
  0x12   : > { %650 = vmatprep.mubr.bf16.mxu0 %v706_v4  ;;  %654 = vmatprep.mubr.bf16.mxu1 %v707_v5  ;;  %v709_v11 = vld [vmem:[%s790_s28 + $0x18] ss:$0 sps:$4 sm:$0xff]  }
  0x14   : > { %641 = vmatpush3.bf16.msra.mxu0 %v701_v3  ;;  %669 = vmatpush3.bf16.msra.mxu1 %v701_v3 }
  0x15   : > { %642 = vmatprep.subr.bf16.mxu0 %v702_v6  ;;  %662 = vmatprep.subr.bf16.mxu1 %v702_v6 }
  0x18   : > { %643 = vmatpush3.bf16.msra.mxu0 %v702_v6  ;;  %670 = vmatpush3.bf16.msra.mxu1 %v702_v6 }
  0x19   : > { %644 = vmatprep.subr.bf16.mxu0 %v703_v7  ;;  %663 = vmatprep.subr.bf16.mxu1 %v703_v7 }
  0x1c   : > { %645 = vmatpush3.bf16.msra.mxu0 %v703_v7  ;;  %671 = vmatpush3.bf16.msra.mxu1 %v703_v7 }
  0x1d   : > { %646 = vmatprep.subr.bf16.mxu0 %v704_v8  ;;  %664 = vmatprep.subr.bf16.mxu1 %v704_v8 }
  0x20   : > { %647 = vmatpush3.bf16.msra.mxu0 %v704_v8  ;;  %672 = vmatpush3.bf16.msra.mxu1 %v704_v8 }
  0x21   : > { %648 = vmatprep.subr.bf16.mxu0 %v705_v9  ;;  %665 = vmatprep.subr.bf16.mxu1 %v705_v9 }
  0x24   : > { %649 = vmatpush3.bf16.msra.mxu0 %v705_v9  ;;  %673 = vmatpush3.bf16.msra.mxu1 %v705_v9 }
  0x27   : > { %651 = vmatmul.mubr.bf16.vlgmr.msra.gmra.mrb[0].mxu0 %v708_v10  ;;  %655 = vmatmul.mubr.bf16.vlgmr.msra.gmra.mrb[0].mxu1 %v709_v11 }
  0xfa   : > { %v652_v13 = vpop.f32.mrb[0].mxu0  ;;  %v656_v14 = vpop.f32.mrb[0].mxu1 }
  0xfb   : > { %v468_v15 = vadd.f32 %v652_v13, %v619_v12  ;;  %v472_v16 = vadd.f32 %v656_v14, %v619_v12  ;;  %v405_v17 = vpop.f32.mrb[1].mxu0  ;;  %v421_v18 = vpop.f32.mrb[1].mxu1 }
  0xfc   : > { %v466_v19 = vadd.f32 %v619_v12, %v405_v17  ;;  %v470_v20 = vadd.f32 %v619_v12, %v421_v18  ;;  %v653_v21 = vpop.f32.mrb[2].mxu0  ;;  %v657_v22 = vpop.f32.mrb[2].mxu1 }
  0xfd   : > { %v475_v23 = vmax.f32 %v468_v15, 0.0  ;;  %v479_v24 = vmax.f32 %v472_v16, 0.0  ;;  %v469_v25 = vadd.f32 %v653_v21, %v619_v12  ;;  %v408_v26 = vpop.f32.mrb[3].mxu0  ;;  %v424_v27 = vpop.f32.mrb[3].mxu1 }
  0xfe   : > { %v473_v28 = vmax.f32 %v466_v19, 0.0  ;;  %v477_v29 = vmax.f32 %v470_v20, 0.0  ;;  %v467_v30 = vadd.f32 %v619_v12, %v408_v26  ;;  %v471_v31 = vadd.f32 %v619_v12, %v424_v27 }
  0xff   : > { %482 = vst [vmem:[%s257_s19 + $0x10] sm:$0xff] %v475_v23  ;;  %486 = vst [vmem:[%s257_s19 + $0x30] sm:$0xff] %v479_v24  ;;  %v476_v32 = vmax.f32 %v469_v25, 0.0 }
 0x100   : > { %480 = vst [vmem:[%s257_s19] sm:$0xff] %v473_v28  ;;  %484 = vst [vmem:[%s257_s19 + $0x20] sm:$0xff] %v477_v29  ;;  %v474_v33 = vmax.f32 %v467_v30, 0.0  ;;  %v478_v34 = vmax.f32 %v471_v31, 0.0 }
 0x101   : > { %483 = vst [vmem:[%s257_s19 + $0x18] sm:$0xff] %v476_v32 }
 0x102   : > { %481 = vst [vmem:[%s257_s19 + $0x8] sm:$0xff] %v474_v33  ;;  %485 = vst [vmem:[%s257_s19 + $0x28] sm:$0xff] %v478_v34 }
 0x103 PF: > { %s13_s14 = sadd.s32 1, %s732_s14   ;;  %s828_s12 = smov %s728_s13 }
 0x104   : > { %p10_p5 = scmp.ge.s32.totalorder %s13_s14, 4   ;;  %s829_s13 = smov %s831_s15 }
 0x106   :  { %12 = sbr.rel (!%p10_p5) target bundleno = 2 (0x2), region = 76 }

// kernel: reduction_a_forward.7
= control target key start
LH: loop header
LB: loop body
LE: loop exit
PB: predicated region body
PF: predicated region fallthrough
CT: control target
= control target key end

     0   :  { %s1499_s12 = smov 0   ;;  %s1501_s13 = smov 0   ;;  %s1636_s0 = inlined_call_operand.vmem [shape: bf16[768,128], index: 0, kind: input, shape index: {}]   ;;  %s1637_s1 = inlined_call_operand.vmem [shape: bf16[128,128], index: 1, kind: input, shape index: {}]   ;;  %s1638_s2 = inlined_call_operand.vmem [shape: f32[1,128], index: 2, kind: input, shape index: {}]   ;;  %s1639_s3 = inlined_call_operand.vmem [shape: bf16[768,128], index: 3, kind: output, shape index: {}]  }
   0x1   :  { %s1503_s14 = smov 0  }
   0x2 LB: > { %s32_s15 = sadd.s32 1, %s1473_s13  ;;  %p1128_p0 = scmp.ge.s32.totalorder %s1477_s14, 1  ;;  %s1477_s14 = sphi %s1503_s14, %s13_s14   ;;  %s1473_s13 = sphi %s1501_s13, %s1641_s13   ;;  %s1469_s12 = sphi %s1499_s12, %s1640_s12  }
   0x3   : > { %p34_p1 = scmp.ge.s32.totalorder %s32_s15, 3  ;;  %p188_p2 = scmp.lt.s32.totalorder %s1477_s14, 4 }
   0x5   : > { %s1643_s15 = smov (%p34_p1, %s32_s15), 0  ;;  %p189_p3 = pnand %p1128_p0, %p188_p2 }
   0x6   : > { %v1431_v0 = vld [vmem:[%s1637_s1] sm:$0xff] (!%p189_p3)   ;;  %s1129_s18 = sshll.u32 (!%p189_p3), %s1469_s12, 5  ;;  %v1432_v1 = vld [vmem:[%s1637_s1 + $0x8] sm:$0xff] (!%p189_p3)   ;;  %v1433_v2 = vld [vmem:[%s1637_s1 + $0x10] sm:$0xff] (!%p189_p3)  }
   0x7   : > { %192 = sbr.rel (%p189_p3) target bundleno = 285 (0x11d), region = 32  ;;  %p230_p4 = scmp.lt.s32.totalorder (!%p189_p3), %s1129_s18, 95  ;;  %1343 = vmatprep.subr.bf16.mxu0 (!%p189_p3), %v1431_v0  ;;  %1391 = vmatprep.subr.bf16.mxu1 (!%p189_p3), %v1431_v0  ;;  %v1434_v3 = vld [vmem:[%s1637_s1 + $0x18] sm:$0xff] (!%p189_p3)   ;;  %v1435_v6 = vld [vmem:[%s1637_s1 + $0x20] sm:$0xff] (!%p189_p3)   ;;  %v1436_v7 = vld [vmem:[%s1637_s1 + $0x28] sm:$0xff] (!%p189_p3)  }
   0x8   : > { %1344 = vmatpush3.bf16.msra.mxu0 (!%p189_p3), %v1431_v0  ;;  %1399 = vmatpush3.bf16.msra.mxu1 (!%p189_p3), %v1431_v0  ;;  %v1437_v8 = vld [vmem:[%s1637_s1 + $0x30] sm:$0xff] (!%p189_p3)   ;;  %v1438_v9 = vld [vmem:[%s1637_s1 + $0x38] sm:$0xff] (!%p189_p3)   ;;  %v1570_v24 = vld [vmem:[%s1638_s2] ss:$0 sm:$0xff] (!%p189_p3) }
   0x9   : > { %1345 = vmatprep.subr.bf16.mxu0 (!%p189_p3), %v1432_v1  ;;  %1392 = vmatprep.subr.bf16.mxu1 (!%p189_p3), %v1432_v1 }
   0xc   : > { %1346 = vmatpush3.bf16.msra.mxu0 (!%p189_p3), %v1432_v1  ;;  %1400 = vmatpush3.bf16.msra.mxu1 (!%p189_p3), %v1432_v1 }
   0xd   : > { %1347 = vmatprep.subr.bf16.mxu0 (!%p189_p3), %v1433_v2  ;;  %1393 = vmatprep.subr.bf16.mxu1 (!%p189_p3), %v1433_v2 }
   0xe   : > { %s1645_s18 = smov (!%p230_p4, %s1129_s18), 95 }
   0xf   : > { %s1130_s23 = sshll.u32 %s1645_s18, 2 }
  0x10   : > { %s1534_s26 = scalar_lea.vmem %s1636_s0, %s1130_s23  ;;  %1348 = vmatpush3.bf16.msra.mxu0 %v1433_v2  ;;  %1401 = vmatpush3.bf16.msra.mxu1 %v1433_v2  ;;  %s1585_s17 = scalar_lea.vmem %s1639_s3, %s1130_s23 }
  0x11   : > { %v1439_v4 = vld [vmem:[%s1534_s26] sm:$0xff]   ;;  %1349 = vmatprep.subr.bf16.mxu0 %v1434_v3  ;;  %1394 = vmatprep.subr.bf16.mxu1 %v1434_v3  ;;  %v1441_v10 = vld [vmem:[%s1534_s26 + $0x8] sm:$0xff]   ;;  %v1443_v12 = vld [vmem:[%s1534_s26 + $0x10] sm:$0xff]  }
  0x12   : > { %v1440_v5 = vld [vmem:[%s1534_s26 + $0x40] sm:$0xff]   ;;  %1359 = vmatprep.mubr.bf16.mxu0 %v1439_v4  ;;  %v1442_v11 = vld [vmem:[%s1534_s26 + $0x48] sm:$0xff]   ;;  %v1444_v13 = vld [vmem:[%s1534_s26 + $0x50] sm:$0xff]  }
  0x13   : > { %1375 = vmatprep.mubr.bf16.mxu1 %v1440_v5  ;;  %v1445_v14 = vld [vmem:[%s1534_s26 + $0x18] sm:$0xff]   ;;  %v1447_v16 = vld [vmem:[%s1534_s26 + $0x20] sm:$0xff]   ;;  %v1449_v18 = vld [vmem:[%s1534_s26 + $0x28] sm:$0xff]  }
  0x14   : > { %1350 = vmatpush3.bf16.msra.mxu0 %v1434_v3  ;;  %1402 = vmatpush3.bf16.msra.mxu1 %v1434_v3  ;;  %v1446_v15 = vld [vmem:[%s1534_s26 + $0x58] sm:$0xff]   ;;  %v1448_v17 = vld [vmem:[%s1534_s26 + $0x60] sm:$0xff]   ;;  %v1450_v19 = vld [vmem:[%s1534_s26 + $0x68] sm:$0xff]  }
  0x15   : > { %1351 = vmatprep.subr.bf16.mxu0 %v1435_v6  ;;  %1395 = vmatprep.subr.bf16.mxu1 %v1435_v6  ;;  %v1451_v20 = vld [vmem:[%s1534_s26 + $0x30] sm:$0xff]   ;;  %v1453_v22 = vld [vmem:[%s1534_s26 + $0x38] sm:$0xff]  }
  0x16   : > { %v1452_v21 = vld [vmem:[%s1534_s26 + $0x70] sm:$0xff]   ;;  %v1454_v23 = vld [vmem:[%s1534_s26 + $0x78] sm:$0xff]  }
  0x18   : > { %1352 = vmatpush3.bf16.msra.mxu0 %v1435_v6  ;;  %1403 = vmatpush3.bf16.msra.mxu1 %v1435_v6 }
  0x19   : > { %1353 = vmatprep.subr.bf16.mxu0 %v1436_v7  ;;  %1396 = vmatprep.subr.bf16.mxu1 %v1436_v7 }
  0x1c   : > { %1354 = vmatpush3.bf16.msra.mxu0 %v1436_v7  ;;  %1404 = vmatpush3.bf16.msra.mxu1 %v1436_v7 }
  0x1d   : > { %1355 = vmatprep.subr.bf16.mxu0 %v1437_v8  ;;  %1397 = vmatprep.subr.bf16.mxu1 %v1437_v8 }
  0x20   : > { %1356 = vmatpush3.bf16.msra.mxu0 %v1437_v8  ;;  %1405 = vmatpush3.bf16.msra.mxu1 %v1437_v8 }
  0x21   : > { %1357 = vmatprep.subr.bf16.mxu0 %v1438_v9  ;;  %1398 = vmatprep.subr.bf16.mxu1 %v1438_v9 }
  0x24   : > { %1358 = vmatpush3.bf16.msra.mxu0 %v1438_v9  ;;  %1406 = vmatpush3.bf16.msra.mxu1 %v1438_v9 }
  0x27   : > { %1360 = vmatmul.mubr.bf16.vlgmr.msra.gmra.mrb[0].mxu0 %v1441_v10  ;;  %1376 = vmatmul.mubr.bf16.vlgmr.msra.gmra.mrb[0].mxu1 %v1442_v11 }
  0x28   : > { %1363 = vmatprep.mubr.bf16.mxu0 %v1443_v12  ;;  %1379 = vmatprep.mubr.bf16.mxu1 %v1444_v13 }
  0x2f   : > { %1364 = vmatmul.mubr.bf16.gmra.mrb[4].mxu0 %v1445_v14  ;;  %1380 = vmatmul.mubr.bf16.gmra.mrb[4].mxu1 %v1446_v15 }
  0x30   : > { %1367 = vmatprep.mubr.bf16.mxu0 %v1447_v16  ;;  %1383 = vmatprep.mubr.bf16.mxu1 %v1448_v17 }
  0x37   : > { %1368 = vmatmul.mubr.bf16.gmra.mrb[8].mxu0 %v1449_v18  ;;  %1384 = vmatmul.mubr.bf16.gmra.mrb[8].mxu1 %v1450_v19 }
  0x38   : > { %1371 = vmatprep.mubr.bf16.mxu0 %v1451_v20  ;;  %1387 = vmatprep.mubr.bf16.mxu1 %v1452_v21 }
  0x3f   : > { %1372 = vmatmul.mubr.bf16.gmra.mrb[12].mxu0 %v1453_v22  ;;  %1388 = vmatmul.mubr.bf16.gmra.mrb[12].mxu1 %v1454_v23 }
  0xfa   : > { %v1361_v25 = vpop.f32.mrb[0].mxu0  ;;  %v1377_v26 = vpop.f32.mrb[0].mxu1 }
  0xfb   : > { %v789_v27 = vadd.f32 %v1361_v25, %v1570_v24  ;;  %v805_v28 = vadd.f32 %v1377_v26, %v1570_v24  ;;  %v554_v29 = vpop.f32.mrb[1].mxu0  ;;  %v618_v30 = vpop.f32.mrb[1].mxu1 }
  0xfc   : > { %v787_v31 = vadd.f32 %v1570_v24, %v554_v29  ;;  %v803_v32 = vadd.f32 %v1570_v24, %v618_v30  ;;  %v1362_v33 = vpop.f32.mrb[2].mxu0  ;;  %v1378_v34 = vpop.f32.mrb[2].mxu1 }
  0xfd   : > { %v790_v35 = vadd.f32 %v1362_v33, %v1570_v24  ;;  %v806_v36 = vadd.f32 %v1378_v34, %v1570_v24  ;;  %v557_v37 = vpop.f32.mrb[3].mxu0  ;;  %v621_v38 = vpop.f32.mrb[3].mxu1  ;;  %v821_v41 = vmax.f32 %v789_v27, 0.0  ;;  %v837_v42 = vmax.f32 %v805_v28, 0.0 }
  0xfe   : > { %v788_v39 = vadd.f32 %v1570_v24, %v557_v37  ;;  %v804_v40 = vadd.f32 %v1570_v24, %v621_v38  ;;  %v819_v45 = vmax.f32 %v787_v31, 0.0  ;;  %v835_v46 = vmax.f32 %v803_v32, 0.0 }
  0xff   : > { %v822_v43 = vmax.f32 %v790_v35, 0.0  ;;  %v838_v44 = vmax.f32 %v806_v36, 0.0 }
 0x100   : > { %v820_v47 = vmax.f32 %v788_v39, 0.0  ;;  %v836_v48 = vmax.f32 %v804_v40, 0.0 }
 0x101   : > { %v1232_v49 = vpack.c.bf16 %v822_v43, %v821_v41  ;;  %v1272_v50 = vpack.c.bf16 %v838_v44, %v837_v42 }
 0x102   : > { %v1227_v51 = vpack.c.bf16 %v820_v47, %v819_v45  ;;  %v1267_v52 = vpack.c.bf16 %v836_v48, %v835_v46  ;;  %v1365_v53 = vpop.f32.mrb[4].mxu0  ;;  %v1381_v54 = vpop.f32.mrb[4].mxu1 }
 0x103   : > { %1304 = vst [vmem:[%s1585_s17 + $0x8] sm:$0xff] %v1232_v49   ;;  %1312 = vst [vmem:[%s1585_s17 + $0x48] sm:$0xff] %v1272_v50   ;;  %v793_v55 = vadd.f32 %v1365_v53, %v1570_v24  ;;  %v809_v56 = vadd.f32 %v1381_v54, %v1570_v24  ;;  %v570_v57 = vpop.f32.mrb[5].mxu0  ;;  %v634_v58 = vpop.f32.mrb[5].mxu1 }
 0x104   : > { %1228 = vst [vmem:[%s1585_s17] sm:$0xff] %v1227_v51   ;;  %1311 = vst [vmem:[%s1585_s17 + $0x40] sm:$0xff] %v1267_v52   ;;  %v791_v59 = vadd.f32 %v1570_v24, %v570_v57  ;;  %v807_v60 = vadd.f32 %v1570_v24, %v634_v58  ;;  %v1366_v61 = vpop.f32.mrb[6].mxu0  ;;  %v1382_v62 = vpop.f32.mrb[6].mxu1 }
 0x105   : > { %v794_v63 = vadd.f32 %v1366_v61, %v1570_v24  ;;  %v810_v0 = vadd.f32 %v1382_v62, %v1570_v24  ;;  %v573_v1 = vpop.f32.mrb[7].mxu0  ;;  %v637_v2 = vpop.f32.mrb[7].mxu1  ;;  %v825_v5 = vmax.f32 %v793_v55, 0.0  ;;  %v841_v6 = vmax.f32 %v809_v56, 0.0 }
 0x106   : > { %v792_v3 = vadd.f32 %v1570_v24, %v573_v1  ;;  %v808_v4 = vadd.f32 %v1570_v24, %v637_v2  ;;  %v823_v9 = vmax.f32 %v791_v59, 0.0  ;;  %v839_v10 = vmax.f32 %v807_v60, 0.0 }
 0x107   : > { %v826_v7 = vmax.f32 %v794_v63, 0.0  ;;  %v842_v8 = vmax.f32 %v810_v0, 0.0 }
 0x108   : > { %v824_v11 = vmax.f32 %v792_v3, 0.0  ;;  %v840_v12 = vmax.f32 %v808_v4, 0.0 }
 0x109   : > { %v1242_v13 = vpack.c.bf16 %v826_v7, %v825_v5  ;;  %v1282_v14 = vpack.c.bf16 %v842_v8, %v841_v6 }
 0x10a   : > { %v1237_v15 = vpack.c.bf16 %v824_v11, %v823_v9  ;;  %v1277_v16 = vpack.c.bf16 %v840_v12, %v839_v10  ;;  %v1369_v17 = vpop.f32.mrb[8].mxu0  ;;  %v1385_v18 = vpop.f32.mrb[8].mxu1 }
 0x10b   : > { %1306 = vst [vmem:[%s1585_s17 + $0x18] sm:$0xff] %v1242_v13   ;;  %1314 = vst [vmem:[%s1585_s17 + $0x58] sm:$0xff] %v1282_v14   ;;  %v797_v19 = vadd.f32 %v1369_v17, %v1570_v24  ;;  %v813_v20 = vadd.f32 %v1385_v18, %v1570_v24  ;;  %v586_v21 = vpop.f32.mrb[9].mxu0  ;;  %v650_v22 = vpop.f32.mrb[9].mxu1 }
 0x10c   : > { %1305 = vst [vmem:[%s1585_s17 + $0x10] sm:$0xff] %v1237_v15   ;;  %1313 = vst [vmem:[%s1585_s17 + $0x50] sm:$0xff] %v1277_v16   ;;  %v795_v23 = vadd.f32 %v1570_v24, %v586_v21  ;;  %v811_v25 = vadd.f32 %v1570_v24, %v650_v22  ;;  %v1370_v26 = vpop.f32.mrb[10].mxu0  ;;  %v1386_v27 = vpop.f32.mrb[10].mxu1 }
 0x10d   : > { %v798_v28 = vadd.f32 %v1370_v26, %v1570_v24  ;;  %v814_v29 = vadd.f32 %v1386_v27, %v1570_v24  ;;  %v589_v30 = vpop.f32.mrb[11].mxu0  ;;  %v653_v31 = vpop.f32.mrb[11].mxu1  ;;  %v829_v34 = vmax.f32 %v797_v19, 0.0  ;;  %v845_v35 = vmax.f32 %v813_v20, 0.0 }
 0x10e   : > { %v796_v32 = vadd.f32 %v1570_v24, %v589_v30  ;;  %v812_v33 = vadd.f32 %v1570_v24, %v653_v31  ;;  %v827_v38 = vmax.f32 %v795_v23, 0.0  ;;  %v843_v39 = vmax.f32 %v811_v25, 0.0 }
 0x10f   : > { %v830_v36 = vmax.f32 %v798_v28, 0.0  ;;  %v846_v37 = vmax.f32 %v814_v29, 0.0 }
 0x110   : > { %v828_v40 = vmax.f32 %v796_v32, 0.0  ;;  %v844_v41 = vmax.f32 %v812_v33, 0.0 }
 0x111   : > { %v1252_v42 = vpack.c.bf16 %v830_v36, %v829_v34  ;;  %v1292_v43 = vpack.c.bf16 %v846_v37, %v845_v35 }
 0x112   : > { %v1247_v44 = vpack.c.bf16 %v828_v40, %v827_v38  ;;  %v1287_v45 = vpack.c.bf16 %v844_v41, %v843_v39  ;;  %v1373_v46 = vpop.f32.mrb[12].mxu0  ;;  %v1389_v47 = vpop.f32.mrb[12].mxu1 }
 0x113   : > { %1308 = vst [vmem:[%s1585_s17 + $0x28] sm:$0xff] %v1252_v42   ;;  %1316 = vst [vmem:[%s1585_s17 + $0x68] sm:$0xff] %v1292_v43   ;;  %v801_v48 = vadd.f32 %v1373_v46, %v1570_v24  ;;  %v817_v49 = vadd.f32 %v1389_v47, %v1570_v24  ;;  %v602_v50 = vpop.f32.mrb[13].mxu0  ;;  %v666_v51 = vpop.f32.mrb[13].mxu1 }
 0x114   : > { %1307 = vst [vmem:[%s1585_s17 + $0x20] sm:$0xff] %v1247_v44   ;;  %1315 = vst [vmem:[%s1585_s17 + $0x60] sm:$0xff] %v1287_v45   ;;  %v799_v52 = vadd.f32 %v1570_v24, %v602_v50  ;;  %v815_v53 = vadd.f32 %v1570_v24, %v666_v51  ;;  %v1374_v54 = vpop.f32.mrb[14].mxu0  ;;  %v1390_v55 = vpop.f32.mrb[14].mxu1 }
 0x115   : > { %v802_v56 = vadd.f32 %v1374_v54, %v1570_v24  ;;  %v818_v57 = vadd.f32 %v1390_v55, %v1570_v24  ;;  %v605_v58 = vpop.f32.mrb[15].mxu0  ;;  %v669_v59 = vpop.f32.mrb[15].mxu1  ;;  %v833_v62 = vmax.f32 %v801_v48, 0.0  ;;  %v849_v63 = vmax.f32 %v817_v49, 0.0 }
 0x116   : > { %v800_v60 = vadd.f32 %v1570_v24, %v605_v58  ;;  %v816_v61 = vadd.f32 %v1570_v24, %v669_v59  ;;  %v831_v2 = vmax.f32 %v799_v52, 0.0  ;;  %v847_v3 = vmax.f32 %v815_v53, 0.0 }
 0x117   : > { %v834_v0 = vmax.f32 %v802_v56, 0.0  ;;  %v850_v1 = vmax.f32 %v818_v57, 0.0 }
 0x118   : > { %v832_v4 = vmax.f32 %v800_v60, 0.0  ;;  %v848_v5 = vmax.f32 %v816_v61, 0.0 }
 0x119   : > { %v1262_v6 = vpack.c.bf16 %v834_v0, %v833_v62  ;;  %v1302_v7 = vpack.c.bf16 %v850_v1, %v849_v63 }
 0x11a   : > { %v1257_v8 = vpack.c.bf16 %v832_v4, %v831_v2  ;;  %v1297_v9 = vpack.c.bf16 %v848_v5, %v847_v3 }
 0x11b   : > { %1310 = vst [vmem:[%s1585_s17 + $0x38] sm:$0xff] %v1262_v6   ;;  %1318 = vst [vmem:[%s1585_s17 + $0x78] sm:$0xff] %v1302_v7  }
 0x11c   : > { %1309 = vst [vmem:[%s1585_s17 + $0x30] sm:$0xff] %v1257_v8   ;;  %1317 = vst [vmem:[%s1585_s17 + $0x70] sm:$0xff] %v1297_v9  }
 0x11d PF: > { %s13_s14 = sadd.s32 1, %s1477_s14   ;;  %s1640_s12 = smov %s1473_s13 }
 0x11e   : > { %p10_p5 = scmp.ge.s32.totalorder %s13_s14, 5   ;;  %s1641_s13 = smov %s1643_s15 }
 0x120   :  { %12 = sbr.rel (!%p10_p5) target bundleno = 2 (0x2), region = 76 }

// kernel: reduction_a_forward.8
= control target key start
LH: loop header
LB: loop body
LE: loop exit
PB: predicated region body
PF: predicated region fallthrough
CT: control target
= control target key end

     0   :  { %s1499_s12 = smov 0   ;;  %s1501_s13 = smov 0   ;;  %s1636_s0 = inlined_call_operand.vmem [shape: bf16[512,128], index: 0, kind: input, shape index: {}]   ;;  %s1637_s1 = inlined_call_operand.vmem [shape: bf16[128,128], index: 1, kind: input, shape index: {}]   ;;  %s1638_s2 = inlined_call_operand.vmem [shape: f32[1,128], index: 2, kind: input, shape index: {}]   ;;  %s1639_s3 = inlined_call_operand.vmem [shape: bf16[512,128], index: 3, kind: output, shape index: {}]  }
   0x1   :  { %s1503_s14 = smov 0  }
   0x2 LB: > { %s32_s15 = sadd.s32 1, %s1473_s13  ;;  %p1128_p0 = scmp.ge.s32.totalorder %s1477_s14, 1  ;;  %s1477_s14 = sphi %s1503_s14, %s13_s14   ;;  %s1473_s13 = sphi %s1501_s13, %s1641_s13   ;;  %s1469_s12 = sphi %s1499_s12, %s1640_s12  }
   0x3   : > { %p34_p1 = scmp.ge.s32.totalorder %s32_s15, 2  ;;  %p188_p2 = scmp.lt.s32.totalorder %s1477_s14, 3 }
   0x5   : > { %s1643_s15 = smov (%p34_p1, %s32_s15), 0  ;;  %p189_p3 = pnand %p1128_p0, %p188_p2 }
   0x6   : > { %v1431_v0 = vld [vmem:[%s1637_s1] sm:$0xff] (!%p189_p3)   ;;  %s1129_s18 = sshll.u32 (!%p189_p3), %s1469_s12, 5  ;;  %v1432_v1 = vld [vmem:[%s1637_s1 + $0x8] sm:$0xff] (!%p189_p3)   ;;  %v1433_v2 = vld [vmem:[%s1637_s1 + $0x10] sm:$0xff] (!%p189_p3)  }
   0x7   : > { %192 = sbr.rel (%p189_p3) target bundleno = 285 (0x11d), region = 32  ;;  %p230_p4 = scmp.lt.s32.totalorder (!%p189_p3), %s1129_s18, 63  ;;  %1343 = vmatprep.subr.bf16.mxu0 (!%p189_p3), %v1431_v0  ;;  %1391 = vmatprep.subr.bf16.mxu1 (!%p189_p3), %v1431_v0  ;;  %v1434_v3 = vld [vmem:[%s1637_s1 + $0x18] sm:$0xff] (!%p189_p3)   ;;  %v1435_v6 = vld [vmem:[%s1637_s1 + $0x20] sm:$0xff] (!%p189_p3)   ;;  %v1436_v7 = vld [vmem:[%s1637_s1 + $0x28] sm:$0xff] (!%p189_p3)  }
   0x8   : > { %1344 = vmatpush3.bf16.msra.mxu0 (!%p189_p3), %v1431_v0  ;;  %1399 = vmatpush3.bf16.msra.mxu1 (!%p189_p3), %v1431_v0  ;;  %v1437_v8 = vld [vmem:[%s1637_s1 + $0x30] sm:$0xff] (!%p189_p3)   ;;  %v1438_v9 = vld [vmem:[%s1637_s1 + $0x38] sm:$0xff] (!%p189_p3)   ;;  %v1570_v24 = vld [vmem:[%s1638_s2] ss:$0 sm:$0xff] (!%p189_p3) }
   0x9   : > { %1345 = vmatprep.subr.bf16.mxu0 (!%p189_p3), %v1432_v1  ;;  %1392 = vmatprep.subr.bf16.mxu1 (!%p189_p3), %v1432_v1 }
   0xc   : > { %1346 = vmatpush3.bf16.msra.mxu0 (!%p189_p3), %v1432_v1  ;;  %1400 = vmatpush3.bf16.msra.mxu1 (!%p189_p3), %v1432_v1 }
   0xd   : > { %1347 = vmatprep.subr.bf16.mxu0 (!%p189_p3), %v1433_v2  ;;  %1393 = vmatprep.subr.bf16.mxu1 (!%p189_p3), %v1433_v2 }
   0xe   : > { %s1645_s18 = smov (!%p230_p4, %s1129_s18), 63 }
   0xf   : > { %s1130_s23 = sshll.u32 %s1645_s18, 2 }
  0x10   : > { %s1534_s26 = scalar_lea.vmem %s1636_s0, %s1130_s23  ;;  %1348 = vmatpush3.bf16.msra.mxu0 %v1433_v2  ;;  %1401 = vmatpush3.bf16.msra.mxu1 %v1433_v2  ;;  %s1585_s17 = scalar_lea.vmem %s1639_s3, %s1130_s23 }
  0x11   : > { %v1439_v4 = vld [vmem:[%s1534_s26] sm:$0xff]   ;;  %1349 = vmatprep.subr.bf16.mxu0 %v1434_v3  ;;  %1394 = vmatprep.subr.bf16.mxu1 %v1434_v3  ;;  %v1441_v10 = vld [vmem:[%s1534_s26 + $0x8] sm:$0xff]   ;;  %v1443_v12 = vld [vmem:[%s1534_s26 + $0x10] sm:$0xff]  }
  0x12   : > { %v1440_v5 = vld [vmem:[%s1534_s26 + $0x40] sm:$0xff]   ;;  %1359 = vmatprep.mubr.bf16.mxu0 %v1439_v4  ;;  %v1442_v11 = vld [vmem:[%s1534_s26 + $0x48] sm:$0xff]   ;;  %v1444_v13 = vld [vmem:[%s1534_s26 + $0x50] sm:$0xff]  }
  0x13   : > { %1375 = vmatprep.mubr.bf16.mxu1 %v1440_v5  ;;  %v1445_v14 = vld [vmem:[%s1534_s26 + $0x18] sm:$0xff]   ;;  %v1447_v16 = vld [vmem:[%s1534_s26 + $0x20] sm:$0xff]   ;;  %v1449_v18 = vld [vmem:[%s1534_s26 + $0x28] sm:$0xff]  }
  0x14   : > { %1350 = vmatpush3.bf16.msra.mxu0 %v1434_v3  ;;  %1402 = vmatpush3.bf16.msra.mxu1 %v1434_v3  ;;  %v1446_v15 = vld [vmem:[%s1534_s26 + $0x58] sm:$0xff]   ;;  %v1448_v17 = vld [vmem:[%s1534_s26 + $0x60] sm:$0xff]   ;;  %v1450_v19 = vld [vmem:[%s1534_s26 + $0x68] sm:$0xff]  }
  0x15   : > { %1351 = vmatprep.subr.bf16.mxu0 %v1435_v6  ;;  %1395 = vmatprep.subr.bf16.mxu1 %v1435_v6  ;;  %v1451_v20 = vld [vmem:[%s1534_s26 + $0x30] sm:$0xff]   ;;  %v1453_v22 = vld [vmem:[%s1534_s26 + $0x38] sm:$0xff]  }
  0x16   : > { %v1452_v21 = vld [vmem:[%s1534_s26 + $0x70] sm:$0xff]   ;;  %v1454_v23 = vld [vmem:[%s1534_s26 + $0x78] sm:$0xff]  }
  0x18   : > { %1352 = vmatpush3.bf16.msra.mxu0 %v1435_v6  ;;  %1403 = vmatpush3.bf16.msra.mxu1 %v1435_v6 }
  0x19   : > { %1353 = vmatprep.subr.bf16.mxu0 %v1436_v7  ;;  %1396 = vmatprep.subr.bf16.mxu1 %v1436_v7 }
  0x1c   : > { %1354 = vmatpush3.bf16.msra.mxu0 %v1436_v7  ;;  %1404 = vmatpush3.bf16.msra.mxu1 %v1436_v7 }
  0x1d   : > { %1355 = vmatprep.subr.bf16.mxu0 %v1437_v8  ;;  %1397 = vmatprep.subr.bf16.mxu1 %v1437_v8 }
  0x20   : > { %1356 = vmatpush3.bf16.msra.mxu0 %v1437_v8  ;;  %1405 = vmatpush3.bf16.msra.mxu1 %v1437_v8 }
  0x21   : > { %1357 = vmatprep.subr.bf16.mxu0 %v1438_v9  ;;  %1398 = vmatprep.subr.bf16.mxu1 %v1438_v9 }
  0x24   : > { %1358 = vmatpush3.bf16.msra.mxu0 %v1438_v9  ;;  %1406 = vmatpush3.bf16.msra.mxu1 %v1438_v9 }
  0x27   : > { %1360 = vmatmul.mubr.bf16.vlgmr.msra.gmra.mrb[0].mxu0 %v1441_v10  ;;  %1376 = vmatmul.mubr.bf16.vlgmr.msra.gmra.mrb[0].mxu1 %v1442_v11 }
  0x28   : > { %1363 = vmatprep.mubr.bf16.mxu0 %v1443_v12  ;;  %1379 = vmatprep.mubr.bf16.mxu1 %v1444_v13 }
  0x2f   : > { %1364 = vmatmul.mubr.bf16.gmra.mrb[4].mxu0 %v1445_v14  ;;  %1380 = vmatmul.mubr.bf16.gmra.mrb[4].mxu1 %v1446_v15 }
  0x30   : > { %1367 = vmatprep.mubr.bf16.mxu0 %v1447_v16  ;;  %1383 = vmatprep.mubr.bf16.mxu1 %v1448_v17 }
  0x37   : > { %1368 = vmatmul.mubr.bf16.gmra.mrb[8].mxu0 %v1449_v18  ;;  %1384 = vmatmul.mubr.bf16.gmra.mrb[8].mxu1 %v1450_v19 }
  0x38   : > { %1371 = vmatprep.mubr.bf16.mxu0 %v1451_v20  ;;  %1387 = vmatprep.mubr.bf16.mxu1 %v1452_v21 }
  0x3f   : > { %1372 = vmatmul.mubr.bf16.gmra.mrb[12].mxu0 %v1453_v22  ;;  %1388 = vmatmul.mubr.bf16.gmra.mrb[12].mxu1 %v1454_v23 }
  0xfa   : > { %v1361_v25 = vpop.f32.mrb[0].mxu0  ;;  %v1377_v26 = vpop.f32.mrb[0].mxu1 }
  0xfb   : > { %v789_v27 = vadd.f32 %v1361_v25, %v1570_v24  ;;  %v805_v28 = vadd.f32 %v1377_v26, %v1570_v24  ;;  %v554_v29 = vpop.f32.mrb[1].mxu0  ;;  %v618_v30 = vpop.f32.mrb[1].mxu1 }
  0xfc   : > { %v787_v31 = vadd.f32 %v1570_v24, %v554_v29  ;;  %v803_v32 = vadd.f32 %v1570_v24, %v618_v30  ;;  %v1362_v33 = vpop.f32.mrb[2].mxu0  ;;  %v1378_v34 = vpop.f32.mrb[2].mxu1 }
  0xfd   : > { %v790_v35 = vadd.f32 %v1362_v33, %v1570_v24  ;;  %v806_v36 = vadd.f32 %v1378_v34, %v1570_v24  ;;  %v557_v37 = vpop.f32.mrb[3].mxu0  ;;  %v621_v38 = vpop.f32.mrb[3].mxu1  ;;  %v821_v41 = vmax.f32 %v789_v27, 0.0  ;;  %v837_v42 = vmax.f32 %v805_v28, 0.0 }
  0xfe   : > { %v788_v39 = vadd.f32 %v1570_v24, %v557_v37  ;;  %v804_v40 = vadd.f32 %v1570_v24, %v621_v38  ;;  %v819_v45 = vmax.f32 %v787_v31, 0.0  ;;  %v835_v46 = vmax.f32 %v803_v32, 0.0 }
  0xff   : > { %v822_v43 = vmax.f32 %v790_v35, 0.0  ;;  %v838_v44 = vmax.f32 %v806_v36, 0.0 }
 0x100   : > { %v820_v47 = vmax.f32 %v788_v39, 0.0  ;;  %v836_v48 = vmax.f32 %v804_v40, 0.0 }
 0x101   : > { %v1232_v49 = vpack.c.bf16 %v822_v43, %v821_v41  ;;  %v1272_v50 = vpack.c.bf16 %v838_v44, %v837_v42 }
 0x102   : > { %v1227_v51 = vpack.c.bf16 %v820_v47, %v819_v45  ;;  %v1267_v52 = vpack.c.bf16 %v836_v48, %v835_v46  ;;  %v1365_v53 = vpop.f32.mrb[4].mxu0  ;;  %v1381_v54 = vpop.f32.mrb[4].mxu1 }
 0x103   : > { %1304 = vst [vmem:[%s1585_s17 + $0x8] sm:$0xff] %v1232_v49   ;;  %1312 = vst [vmem:[%s1585_s17 + $0x48] sm:$0xff] %v1272_v50   ;;  %v793_v55 = vadd.f32 %v1365_v53, %v1570_v24  ;;  %v809_v56 = vadd.f32 %v1381_v54, %v1570_v24  ;;  %v570_v57 = vpop.f32.mrb[5].mxu0  ;;  %v634_v58 = vpop.f32.mrb[5].mxu1 }
 0x104   : > { %1228 = vst [vmem:[%s1585_s17] sm:$0xff] %v1227_v51   ;;  %1311 = vst [vmem:[%s1585_s17 + $0x40] sm:$0xff] %v1267_v52   ;;  %v791_v59 = vadd.f32 %v1570_v24, %v570_v57  ;;  %v807_v60 = vadd.f32 %v1570_v24, %v634_v58  ;;  %v1366_v61 = vpop.f32.mrb[6].mxu0  ;;  %v1382_v62 = vpop.f32.mrb[6].mxu1 }
 0x105   : > { %v794_v63 = vadd.f32 %v1366_v61, %v1570_v24  ;;  %v810_v0 = vadd.f32 %v1382_v62, %v1570_v24  ;;  %v573_v1 = vpop.f32.mrb[7].mxu0  ;;  %v637_v2 = vpop.f32.mrb[7].mxu1  ;;  %v825_v5 = vmax.f32 %v793_v55, 0.0  ;;  %v841_v6 = vmax.f32 %v809_v56, 0.0 }
 0x106   : > { %v792_v3 = vadd.f32 %v1570_v24, %v573_v1  ;;  %v808_v4 = vadd.f32 %v1570_v24, %v637_v2  ;;  %v823_v9 = vmax.f32 %v791_v59, 0.0  ;;  %v839_v10 = vmax.f32 %v807_v60, 0.0 }
 0x107   : > { %v826_v7 = vmax.f32 %v794_v63, 0.0  ;;  %v842_v8 = vmax.f32 %v810_v0, 0.0 }
 0x108   : > { %v824_v11 = vmax.f32 %v792_v3, 0.0  ;;  %v840_v12 = vmax.f32 %v808_v4, 0.0 }
 0x109   : > { %v1242_v13 = vpack.c.bf16 %v826_v7, %v825_v5  ;;  %v1282_v14 = vpack.c.bf16 %v842_v8, %v841_v6 }
 0x10a   : > { %v1237_v15 = vpack.c.bf16 %v824_v11, %v823_v9  ;;  %v1277_v16 = vpack.c.bf16 %v840_v12, %v839_v10  ;;  %v1369_v17 = vpop.f32.mrb[8].mxu0  ;;  %v1385_v18 = vpop.f32.mrb[8].mxu1 }
 0x10b   : > { %1306 = vst [vmem:[%s1585_s17 + $0x18] sm:$0xff] %v1242_v13   ;;  %1314 = vst [vmem:[%s1585_s17 + $0x58] sm:$0xff] %v1282_v14   ;;  %v797_v19 = vadd.f32 %v1369_v17, %v1570_v24  ;;  %v813_v20 = vadd.f32 %v1385_v18, %v1570_v24  ;;  %v586_v21 = vpop.f32.mrb[9].mxu0  ;;  %v650_v22 = vpop.f32.mrb[9].mxu1 }
 0x10c   : > { %1305 = vst [vmem:[%s1585_s17 + $0x10] sm:$0xff] %v1237_v15   ;;  %1313 = vst [vmem:[%s1585_s17 + $0x50] sm:$0xff] %v1277_v16   ;;  %v795_v23 = vadd.f32 %v1570_v24, %v586_v21  ;;  %v811_v25 = vadd.f32 %v1570_v24, %v650_v22  ;;  %v1370_v26 = vpop.f32.mrb[10].mxu0  ;;  %v1386_v27 = vpop.f32.mrb[10].mxu1 }
 0x10d   : > { %v798_v28 = vadd.f32 %v1370_v26, %v1570_v24  ;;  %v814_v29 = vadd.f32 %v1386_v27, %v1570_v24  ;;  %v589_v30 = vpop.f32.mrb[11].mxu0  ;;  %v653_v31 = vpop.f32.mrb[11].mxu1  ;;  %v829_v34 = vmax.f32 %v797_v19, 0.0  ;;  %v845_v35 = vmax.f32 %v813_v20, 0.0 }
 0x10e   : > { %v796_v32 = vadd.f32 %v1570_v24, %v589_v30  ;;  %v812_v33 = vadd.f32 %v1570_v24, %v653_v31  ;;  %v827_v38 = vmax.f32 %v795_v23, 0.0  ;;  %v843_v39 = vmax.f32 %v811_v25, 0.0 }
 0x10f   : > { %v830_v36 = vmax.f32 %v798_v28, 0.0  ;;  %v846_v37 = vmax.f32 %v814_v29, 0.0 }
 0x110   : > { %v828_v40 = vmax.f32 %v796_v32, 0.0  ;;  %v844_v41 = vmax.f32 %v812_v33, 0.0 }
 0x111   : > { %v1252_v42 = vpack.c.bf16 %v830_v36, %v829_v34  ;;  %v1292_v43 = vpack.c.bf16 %v846_v37, %v845_v35 }
 0x112   : > { %v1247_v44 = vpack.c.bf16 %v828_v40, %v827_v38  ;;  %v1287_v45 = vpack.c.bf16 %v844_v41, %v843_v39  ;;  %v1373_v46 = vpop.f32.mrb[12].mxu0  ;;  %v1389_v47 = vpop.f32.mrb[12].mxu1 }
 0x113   : > { %1308 = vst [vmem:[%s1585_s17 + $0x28] sm:$0xff] %v1252_v42   ;;  %1316 = vst [vmem:[%s1585_s17 + $0x68] sm:$0xff] %v1292_v43   ;;  %v801_v48 = vadd.f32 %v1373_v46, %v1570_v24  ;;  %v817_v49 = vadd.f32 %v1389_v47, %v1570_v24  ;;  %v602_v50 = vpop.f32.mrb[13].mxu0  ;;  %v666_v51 = vpop.f32.mrb[13].mxu1 }
 0x114   : > { %1307 = vst [vmem:[%s1585_s17 + $0x20] sm:$0xff] %v1247_v44   ;;  %1315 = vst [vmem:[%s1585_s17 + $0x60] sm:$0xff] %v1287_v45   ;;  %v799_v52 = vadd.f32 %v1570_v24, %v602_v50  ;;  %v815_v53 = vadd.f32 %v1570_v24, %v666_v51  ;;  %v1374_v54 = vpop.f32.mrb[14].mxu0  ;;  %v1390_v55 = vpop.f32.mrb[14].mxu1 }
 0x115   : > { %v802_v56 = vadd.f32 %v1374_v54, %v1570_v24  ;;  %v818_v57 = vadd.f32 %v1390_v55, %v1570_v24  ;;  %v605_v58 = vpop.f32.mrb[15].mxu0  ;;  %v669_v59 = vpop.f32.mrb[15].mxu1  ;;  %v833_v62 = vmax.f32 %v801_v48, 0.0  ;;  %v849_v63 = vmax.f32 %v817_v49, 0.0 }
 0x116   : > { %v800_v60 = vadd.f32 %v1570_v24, %v605_v58  ;;  %v816_v61 = vadd.f32 %v1570_v24, %v669_v59  ;;  %v831_v2 = vmax.f32 %v799_v52, 0.0  ;;  %v847_v3 = vmax.f32 %v815_v53, 0.0 }
 0x117   : > { %v834_v0 = vmax.f32 %v802_v56, 0.0  ;;  %v850_v1 = vmax.f32 %v818_v57, 0.0 }
 0x118   : > { %v832_v4 = vmax.f32 %v800_v60, 0.0  ;;  %v848_v5 = vmax.f32 %v816_v61, 0.0 }
 0x119   : > { %v1262_v6 = vpack.c.bf16 %v834_v0, %v833_v62  ;;  %v1302_v7 = vpack.c.bf16 %v850_v1, %v849_v63 }
 0x11a   : > { %v1257_v8 = vpack.c.bf16 %v832_v4, %v831_v2  ;;  %v1297_v9 = vpack.c.bf16 %v848_v5, %v847_v3 }
 0x11b   : > { %1310 = vst [vmem:[%s1585_s17 + $0x38] sm:$0xff] %v1262_v6   ;;  %1318 = vst [vmem:[%s1585_s17 + $0x78] sm:$0xff] %v1302_v7  }
 0x11c   : > { %1309 = vst [vmem:[%s1585_s17 + $0x30] sm:$0xff] %v1257_v8   ;;  %1317 = vst [vmem:[%s1585_s17 + $0x70] sm:$0xff] %v1297_v9  }
 0x11d PF: > { %s13_s14 = sadd.s32 1, %s1477_s14   ;;  %s1640_s12 = smov %s1473_s13 }
 0x11e   : > { %p10_p5 = scmp.ge.s32.totalorder %s13_s14, 4   ;;  %s1641_s13 = smov %s1643_s15 }
 0x120   :  { %12 = sbr.rel (!%p10_p5) target bundleno = 2 (0x2), region = 76 }

// kernel: reduction_a_forward.5
= control target key start
LH: loop header
LB: loop body
LE: loop exit
PB: predicated region body
PF: predicated region fallthrough
CT: control target
= control target key end

     0   :  { %s381_s6 = smov 0   ;;  %s383_s7 = smov 0   ;;  %s456_s0 = inlined_call_operand.vmem [shape: f32[9,112,128], index: 0, kind: input, shape index: {}]   ;;  %s457_s1 = inlined_call_operand.vmem [shape: f32[112,128], index: 1, kind: output, shape index: {}]  }
   0x1   :  { %s385_s8 = smov 0   ;;  %s387_s9 = smov 0  }
   0x2   :  { %s389_s10 = smov 0  }
   0x3 LB: > { %s20_s11 = sadd.s32 1, %s360_s8  ;;  %s23_s12 = sadd.s32 1, %s364_s9  ;;  %s368_s10 = sphi %s389_s10, %s11_s10   ;;  %s364_s9 = sphi %s387_s9, %s461_s9   ;;  %s360_s8 = sphi %s385_s8, %s460_s8   ;;  %s356_s7 = sphi %s383_s7, %s459_s7   ;;  %s352_s6 = sphi %s381_s6, %s458_s6  }
   0x4   : > { %p21_p0 = scmp.ge.s32.totalorder %s20_s11, 9  ;;  %p281_p1 = scmp.ge.s32.totalorder %s368_s10, 1 }
   0x5   : > { %p106_p2 = scmp.lt.s32.totalorder %s368_s10, 19 }
   0x6   : > { %s463_s11 = smov (%p21_p0, %s20_s11), 0  ;;  %s465_s12 = smov (!%p21_p0, %s23_s12), %s364_s9 }
   0x7   : > { %p107_p3 = pnand %p281_p1, %p106_p2  ;;  %p25_p4 = scmp.ge.s32.totalorder %s465_s12, 2 }
   0x8   : > { %s130_s13 = smul.u32 (!%p107_p3), 7, %s356_s7  ;;  %p131_p5 = scmp.lt.s32.totalorder (!%p107_p3), %s352_s6, 8 }
   0x9   : > { %s467_s12 = smov (%p25_p4, %s465_s12), 0  ;;  %110 = sbr.rel (%p107_p3) target bundleno = 41 (0x29), region = 24 }
   0xa   : > { %p133_p6 = scmp.lt.s32.totalorder (!%p107_p3), %s130_s13, 13  ;;  %p284_p7 = scmp.ne.s32.totalorder (!%p107_p3), %s352_s6, 0 }
  0x10   : > { %s132_s14 = scalar_select %p131_p5, %s352_s6, 8 }
  0x11   : > { %s469_s13 = smov (!%p133_p6, %s130_s13), 13  ;;  %149 = sbr.rel (%p284_p7) target bundleno = 24 (0x18), region = 28 }
  0x12   : > { %s288_s15 = smul.u32 14, %s132_s14  ;;  %s283_s17 = sshll.u32 %s469_s13, 3  ;;  %v370_v0 = vmov (!%p284_p7), -inf  }
  0x13   : > { %s418_s21 = scalar_lea.vmem %s457_s1, %s283_s17  ;;  %150 = vst [vmem:[#allocation2] sm:$0xff] (!%p284_p7), %v370_v0  ;;  %151 = vst [vmem:[#allocation2 + $0x8] sm:$0xff] (!%p284_p7), %v370_v0 }
  0x14   : > { %s136_s16 = sadd.s32 %s288_s15, %s469_s13  ;;  %152 = vst [vmem:[#allocation2 + $0x10] sm:$0xff] (!%p284_p7), %v370_v0  ;;  %153 = vst [vmem:[#allocation2 + $0x18] sm:$0xff] (!%p284_p7), %v370_v0 }
  0x15   : > { %s282_s18 = sshll.u32 %s136_s16, 3  ;;  %154 = vst [vmem:[#allocation2 + $0x20] sm:$0xff] (!%p284_p7), %v370_v0  ;;  %155 = vst [vmem:[#allocation2 + $0x28] sm:$0xff] (!%p284_p7), %v370_v0 }
  0x16   : > { %s423_s24 = scalar_lea.vmem %s456_s0, %s282_s18  ;;  %156 = vst [vmem:[#allocation2 + $0x30] sm:$0xff] (!%p284_p7), %v370_v0 }
  0x18 PF: > { %v164_v2 = vld [vmem:[%s423_s24] sm:$0xff]  ;;  %v165_v5 = vld [vmem:[%s423_s24 + $0x8] sm:$0xff]  ;;  %v166_v7 = vld [vmem:[%s423_s24 + $0x10] sm:$0xff]  ;;  %p285_p8 = scmp.ne.s32.totalorder %s352_s6, 8 }
  0x19   : > { %v167_v11 = vld [vmem:[%s423_s24 + $0x18] sm:$0xff]  ;;  %v168_v14 = vld [vmem:[%s423_s24 + $0x20] sm:$0xff]  ;;  %v169_v16 = vld [vmem:[%s423_s24 + $0x28] sm:$0xff] }
  0x1a   : > { %v157_v1 = vld [vmem:[#allocation2] sm:$0xff]  ;;  %v158_v3 = vld [vmem:[#allocation2 + $0x8] sm:$0xff]  ;;  %v170_v20 = vld [vmem:[%s423_s24 + $0x30] sm:$0xff]  ;;  %188 = sbr.rel (%p285_p8) target bundleno = 41 (0x29), region = 32 }
  0x1b   : > { %v171_v4 = vmax.f32 %v157_v1, %v164_v2  ;;  %v159_v6 = vld [vmem:[#allocation2 + $0x10] sm:$0xff]  ;;  %v172_v8 = vmax.f32 %v158_v3, %v165_v5  ;;  %v160_v10 = vld [vmem:[#allocation2 + $0x18] sm:$0xff] }
  0x1c   : > { %v173_v9 = vmax.f32 %v159_v6, %v166_v7  ;;  %v161_v12 = vld [vmem:[#allocation2 + $0x20] sm:$0xff]  ;;  %v174_v13 = vmax.f32 %v160_v10, %v167_v11  ;;  %v162_v15 = vld [vmem:[#allocation2 + $0x28] sm:$0xff] }
  0x1d   : > { %178 = vst [vmem:[#allocation2] sm:$0xff] %v171_v4  ;;  %179 = vst [vmem:[#allocation2 + $0x8] sm:$0xff] %v172_v8  ;;  %v175_v17 = vmax.f32 %v161_v12, %v168_v14  ;;  %v176_v18 = vmax.f32 %v162_v15, %v169_v16  ;;  %v163_v19 = vld [vmem:[#allocation2 + $0x30] sm:$0xff] }
  0x1e   : > { %180 = vst [vmem:[#allocation2 + $0x10] sm:$0xff] %v173_v9  ;;  %181 = vst [vmem:[#allocation2 + $0x18] sm:$0xff] %v174_v13  ;;  %v177_v21 = vmax.f32 %v163_v19, %v170_v20 }
  0x1f   : > { %182 = vst [vmem:[#allocation2 + $0x20] sm:$0xff] %v175_v17  ;;  %183 = vst [vmem:[#allocation2 + $0x28] sm:$0xff] %v176_v18 }
  0x20   : > { %184 = vst [vmem:[#allocation2 + $0x30] sm:$0xff] %v177_v21 }
  0x24   : > { %v189_v22 = vld [vmem:[#allocation2] sm:$0xff]  ;;  %v190_v23 = vld [vmem:[#allocation2 + $0x8] sm:$0xff] }
  0x25   : > { %v191_v24 = vld [vmem:[#allocation2 + $0x10] sm:$0xff]  ;;  %196 = vst [vmem:[%s418_s21] sm:$0xff] %v189_v22  ;;  %197 = vst [vmem:[%s418_s21 + $0x8] sm:$0xff] %v190_v23  ;;  %v192_v25 = vld [vmem:[#allocation2 + $0x18] sm:$0xff] }
  0x26   : > { %198 = vst [vmem:[%s418_s21 + $0x10] sm:$0xff] %v191_v24  ;;  %v193_v26 = vld [vmem:[#allocation2 + $0x20] sm:$0xff]  ;;  %v194_v27 = vld [vmem:[#allocation2 + $0x28] sm:$0xff]  ;;  %199 = vst [vmem:[%s418_s21 + $0x18] sm:$0xff] %v192_v25 }
  0x27   : > { %200 = vst [vmem:[%s418_s21 + $0x20] sm:$0xff] %v193_v26  ;;  %201 = vst [vmem:[%s418_s21 + $0x28] sm:$0xff] %v194_v27  ;;  %v195_v28 = vld [vmem:[#allocation2 + $0x30] sm:$0xff] }
  0x28   : > { %202 = vst [vmem:[%s418_s21 + $0x30] sm:$0xff] %v195_v28 }
  0x29 PF: > { %s11_s10 = sadd.s32 1, %s368_s10   ;;  %s458_s6 = smov %s360_s8 }
  0x2a   : > { %p8_p9 = scmp.ge.s32.totalorder %s11_s10, 20   ;;  %s459_s7 = smov %s364_s9 }
  0x2b   : > { %s460_s8 = smov %s463_s11  ;;  %s461_s9 = smov %s467_s12 }
  0x2c   :  { %10 = sbr.rel (!%p8_p9) target bundleno = 3 (0x3), region = 62 }

</bundles_post_ra>
